<compile_context>
chip_gen: v7x
topology: tpu7x:2x2x1
jax: 0.10.0
libtpu: 0.0.40
codegen_flags: <defaults>
</compile_context>

<pallas_src>
import jax
import jax.numpy as jnp
from jax.experimental import pallas as pl
from jax.experimental.pallas import tpu as pltpu

# ---- synthetic hyper-parameters (mirror the module's __init__) ----------------
N_PHONES = 16                        # syllable_embedding_size
SPEAKER_EMBEDDING_SIZE = 32
CONTEXT_SIZE = 1
SIZE_MULT = 1 + 2 * CONTEXT_SIZE     # = 3  -> len(xs)
D_IN = 16                            # input feature size fed to model1
EMBED = 32                           # embedding_size
HIDDEN = 32                          # hidden_size
NUM_CLASSES = 8
SEG_FEAT = (1 + N_PHONES) * SIZE_MULT            # model2 input size (51)
TONE_OUT = SIZE_MULT * EMBED                     # 96
FINAL = TONE_OUT + HIDDEN + HIDDEN               # classifier input size (160)
BATCH = 8

# ---- kernel tiling knobs -------------------------------------------------------
ROW_TILE = 2048          # max batch rows per grid step (review: 2k-4k; 2k keeps the
                         # lane-padded narrow input blocks ~24 MiB, safe on v7x)
MIN_GRID_STEPS = 4       # aim for >= 4 steps so megacore sharding + pipelining engage
PALLAS_MIN_BATCH = 128   # below this, let XLA fuse the four tiny GEMMs directly

# ---- weight-slab layout (row offsets; every piece starts on an 8-row tile) -----
SLAB_COLS = 32                             # = EMBED = HIDDEN >= NUM_CLASSES
ROW_W1 = 0                                 # (D_IN, EMBED)            rows   0:16
ROW_W2_OH = ROW_W1 + 16                    # (48, HIDDEN)             rows  16:64
ROW_W3 = ROW_W2_OH + SIZE_MULT * N_PHONES  # (32, HIDDEN)             rows  64:96
ROW_W2_DUR = ROW_W3 + 32                   # (3, HIDDEN) (+5 zero)    rows  96:104
ROW_BIAS = ROW_W2_DUR + 8                  # b1,b2,b3,bc (+4 zero)    rows 104:112
ROW_WCT0 = ROW_BIAS + 8                    # (EMBED, NC zero-pad->32) rows 112:144
ROW_WCT1 = ROW_WCT0 + 32                   # rows 144:176
ROW_WCT2 = ROW_WCT1 + 32                   # rows 176:208
ROW_WCS = ROW_WCT2 + 32                    # rows 208:240
ROW_WCK = ROW_WCS + 32                     # rows 240:272
SLAB_ROWS = ROW_WCK + 32                   # 272


def embedding_model_kernel(x0_ref, x1_ref, x2_ref, durs_ref, oh_ref, spk_ref,
                           slab_ref, out_ref):
    f32 = jnp.float32

    # ---- carve the packed weight slab with static, tile-aligned slices --------
    w1 = slab_ref[ROW_W1:ROW_W1 + D_IN, :]
    w2_oh = slab_ref[ROW_W2_OH:ROW_W2_OH + SIZE_MULT * N_PHONES, :]
    w3 = slab_ref[ROW_W3:ROW_W3 + SPEAKER_EMBEDDING_SIZE, :]
    w2_dur = slab_ref[ROW_W2_DUR:ROW_W2_DUR + SIZE_MULT, :]
    biases = slab_ref[ROW_BIAS:ROW_BIAS + 8, :]
    b1 = biases[0:1, :]
    b2 = biases[1:2, :]
    b3 = biases[2:3, :]
    bc = biases[3:4, :]
    wct0 = slab_ref[ROW_WCT0:ROW_WCT0 + EMBED, :]
    wct1 = slab_ref[ROW_WCT1:ROW_WCT1 + EMBED, :]
    wct2 = slab_ref[ROW_WCT2:ROW_WCT2 + EMBED, :]
    wcs = slab_ref[ROW_WCS:ROW_WCS + HIDDEN, :]
    wck = slab_ref[ROW_WCK:ROW_WCK + HIDDEN, :]

    # ---- tone branch: relu(model1(x_i)) with the shared weight -----------------
    t0 = jnp.maximum(jnp.dot(x0_ref[...], w1, preferred_element_type=f32) + b1, 0.0)
    t1 = jnp.maximum(jnp.dot(x1_ref[...], w1, preferred_element_type=f32) + b1, 0.0)
    t2 = jnp.maximum(jnp.dot(x2_ref[...], w1, preferred_element_type=f32) + b1, 0.0)

    # ---- segment branch: relu(model2(hstack([durs, onehots]))) -----------------
    # concat-free: w2 is split into its durs rows and its onehot rows.
    seg = jnp.maximum(
        jnp.dot(durs_ref[...], w2_dur, preferred_element_type=f32)
        + jnp.dot(oh_ref[...], w2_oh, preferred_element_type=f32) + b2, 0.0)

    # ---- speaker branch: relu(model3(spk_embd)) --------------------------------
    spk = jnp.maximum(jnp.dot(spk_ref[...], w3, preferred_element_type=f32) + b3, 0.0)

    # ---- classifier: per-branch partial sums (no in-kernel concatenate) --------
    # classifier weight pieces (and bc) are zero-padded from NUM_CLASSES to 32
    # columns in the slab, so only the first NUM_CLASSES columns are meaningful.
    res = (jnp.dot(t0, wct0, preferred_element_type=f32)
           + jnp.dot(t1, wct1, preferred_element_type=f32)
           + jnp.dot(t2, wct2, preferred_element_type=f32)
           + jnp.dot(seg, wcs, preferred_element_type=f32)
           + jnp.dot(spk, wck, preferred_element_type=f32)
           + bc)
    out_ref[...] = res[:, :NUM_CLASSES]


def _pack_weight_slab(params):
    """One-time packing of all weights/biases into a single (272, 32) f32 slab."""
    w1, b1, w2, b2, w3, b3, wc, bc = params
    slab = jnp.zeros((SLAB_ROWS, SLAB_COLS), jnp.float32)
    slab = slab.at[ROW_W1:ROW_W1 + D_IN, :EMBED].set(w1)
    slab = slab.at[ROW_W2_OH:ROW_W2_OH + SIZE_MULT * N_PHONES, :HIDDEN].set(w2[SIZE_MULT:])
    slab = slab.at[ROW_W3:ROW_W3 + SPEAKER_EMBEDDING_SIZE, :HIDDEN].set(w3)
    slab = slab.at[ROW_W2_DUR:ROW_W2_DUR + SIZE_MULT, :HIDDEN].set(w2[:SIZE_MULT])
    slab = slab.at[ROW_BIAS + 0, :EMBED].set(b1[0])
    slab = slab.at[ROW_BIAS + 1, :HIDDEN].set(b2[0])
    slab = slab.at[ROW_BIAS + 2, :HIDDEN].set(b3[0])
    slab = slab.at[ROW_BIAS + 3, :NUM_CLASSES].set(bc[0])
    # classifier weight split per branch (hstack order [t0|t1|t2|seg|spk]),
    # zero-padded from NUM_CLASSES to 32 columns.
    slab = slab.at[ROW_WCT0:ROW_WCT0 + EMBED, :NUM_CLASSES].set(wc[0:EMBED])
    slab = slab.at[ROW_WCT1:ROW_WCT1 + EMBED, :NUM_CLASSES].set(wc[EMBED:2 * EMBED])
    slab = slab.at[ROW_WCT2:ROW_WCT2 + EMBED, :NUM_CLASSES].set(wc[2 * EMBED:TONE_OUT])
    slab = slab.at[ROW_WCS:ROW_WCS + HIDDEN, :NUM_CLASSES].set(wc[TONE_OUT:TONE_OUT + HIDDEN])
    slab = slab.at[ROW_WCK:ROW_WCK + HIDDEN, :NUM_CLASSES].set(wc[TONE_OUT + HIDDEN:])
    return slab


def _choose_row_tile(batch):
    """Biggest sublane-aligned tile <= ROW_TILE that still gives >= MIN_GRID_STEPS
    grid steps for moderate batches (so v7x's 2 TensorCores both get work)."""
    target = pl.cdiv(batch, MIN_GRID_STEPS)
    return min(ROW_TILE, max(8, ((target + 7) // 8) * 8))


def embedding_model_xla(xs, durs, onehots, spk_embd, params):
    """Plain-JAX forward: reference checker and small-batch fast path (XLA fuses it)."""
    w1, b1, w2, b2, w3, b3, wc, bc = params
    tones = [jax.nn.relu(x @ w1 + b1) for x in xs]
    seg_feats = jnp.concatenate([durs, onehots], axis=-1)
    seg = jax.nn.relu(seg_feats @ w2 + b2)
    spk = jax.nn.relu(spk_embd @ w3 + b3)
    feats = jnp.concatenate(tones + [seg, spk], axis=-1)
    return feats @ wc + bc


def embedding_model_forward(xs, durs, onehots, spk_embd, params, *, force_pallas=False):
    """xs: list of SIZE_MULT (B, D_IN) arrays; durs: (B, SIZE_MULT);
    onehots: (B, SIZE_MULT*N_PHONES); spk_embd: (B, SPEAKER_EMBEDDING_SIZE)."""
    B = xs[0].shape[0]
    if not force_pallas and B < PALLAS_MIN_BATCH:
        # Latency regime: nothing to pipeline or shard at grid=(1,) -> let XLA fuse.
        return embedding_model_xla(xs, durs, onehots, spk_embd, params)

    slab = _pack_weight_slab(params)        # tiny (~35 KB), one-time weight packing
    bm = _choose_row_tile(B)
    grid = (pl.cdiv(B, bm),)                # ragged edge handled by partial blocks

    def row_spec(cols):
        return pl.BlockSpec((bm, cols), lambda i: (i, 0))

    slab_spec = pl.BlockSpec((SLAB_ROWS, SLAB_COLS), lambda i: (0, 0))  # resident

    out = pl.pallas_call(
        embedding_model_kernel,
        out_shape=jax.ShapeDtypeStruct((B, NUM_CLASSES), jnp.float32),
        grid=grid,
        in_specs=[
            row_spec(D_IN), row_spec(D_IN), row_spec(D_IN),
            row_spec(SIZE_MULT), row_spec(SIZE_MULT * N_PHONES),
            row_spec(SPEAKER_EMBEDDING_SIZE),
            slab_spec,
        ],
        out_specs=row_spec(NUM_CLASSES),
        compiler_params=pltpu.CompilerParams(
            # batch rows are independent -> megacore-shardable on v7x
            dimension_semantics=("parallel",),
            # explicit budget: ~24 MiB used at bm=2048, 48 MiB cap is safe on v7x's
            # 64 MiB physical VMEM and leaves room on v5e/v6e (128 MiB).
            vmem_limit_bytes=48 * 1024 * 1024,
        ),
    )(xs[0], xs[1], xs[2], durs, onehots, spk_embd, slab)
    return out


if __name__ == "__main__":
    key = jax.random.PRNGKey(0)
    keys = jax.random.split(key, 16)

    # deterministic synthetic parameters (no checkpoint loading)
    w1 = jax.random.normal(keys[0], (D_IN, EMBED), jnp.float32) * 0.1
    b1 = jax.random.normal(keys[1], (1, EMBED), jnp.float32) * 0.1
    w2 = jax.random.normal(keys[2], (SEG_FEAT, HIDDEN), jnp.float32) * 0.1
    b2 = jax.random.normal(keys[3], (1, HIDDEN), jnp.float32) * 0.1
    w3 = jax.random.normal(keys[4], (SPEAKER_EMBEDDING_SIZE, HIDDEN), jnp.float32) * 0.1
    b3 = jax.random.normal(keys[5], (1, HIDDEN), jnp.float32) * 0.1
    wc = jax.random.normal(keys[6], (FINAL, NUM_CLASSES), jnp.float32) * 0.1
    bc = jax.random.normal(keys[7], (1, NUM_CLASSES), jnp.float32) * 0.1
    params = (w1, b1, w2, b2, w3, b3, wc, bc)

    # ---- small demo batch (forces the Pallas path; single-step grid) -----------
    xs = [jax.random.normal(keys[8 + i], (BATCH, D_IN), jnp.float32)
          for i in range(SIZE_MULT)]
    durs = jax.random.uniform(keys[11], (BATCH, SIZE_MULT), jnp.float32)
    onehots = jax.random.uniform(keys[12], (BATCH, SIZE_MULT * N_PHONES), jnp.float32)
    spk_embd = jax.random.normal(keys[13], (BATCH, SPEAKER_EMBEDDING_SIZE), jnp.float32)

    out = embedding_model_forward(xs, durs, onehots, spk_embd, params, force_pallas=True)
    out = jax.block_until_ready(out)
    ref = embedding_model_xla(xs, durs, onehots, spk_embd, params)
    assert out.shape == (BATCH, NUM_CLASSES)
    assert jnp.allclose(out, ref, atol=1e-4, rtol=1e-4)

    # ---- moderate ragged batch: exercises the multi-step "parallel" grid and the
    # partial edge block (B=200 -> bm=56, grid=(4,)), via the auto-dispatch path --
    B2 = 200
    k2 = jax.random.split(keys[14], 8)
    xs2 = [jax.random.normal(k2[i], (B2, D_IN), jnp.float32) for i in range(SIZE_MULT)]
    durs2 = jax.random.uniform(k2[3], (B2, SIZE_MULT), jnp.float32)
    onehots2 = jax.random.uniform(k2[4], (B2, SIZE_MULT * N_PHONES), jnp.float32)
    spk2 = jax.random.normal(k2[5], (B2, SPEAKER_EMBEDDING_SIZE), jnp.float32)

    out2 = embedding_model_forward(xs2, durs2, onehots2, spk2, params)
    out2 = jax.block_until_ready(out2)
    ref2 = embedding_model_xla(xs2, durs2, onehots2, spk2, params)
    assert out2.shape == (B2, NUM_CLASSES)
    assert jnp.allclose(out2, ref2, atol=1e-4, rtol=1e-4)

    print("KERNEL_OK")
</pallas_src>

<mosaic_0001>
module attributes {stable_mosaic.version = 11 : i64} {
  func.func @embedding_model_kernel(%arg0: i32, %arg1: memref<8x16xf32, #tpu.memory_space<vmem>>, %arg2: memref<8x16xf32, #tpu.memory_space<vmem>>, %arg3: memref<8x16xf32, #tpu.memory_space<vmem>>, %arg4: memref<8x3xf32, #tpu.memory_space<vmem>>, %arg5: memref<8x48xf32, #tpu.memory_space<vmem>>, %arg6: memref<8x32xf32, #tpu.memory_space<vmem>>, %arg7: memref<272x32xf32, #tpu.memory_space<vmem>>, %arg8: memref<8x8xf32, #tpu.memory_space<vmem>>) attributes {dimension_semantics = [#tpu.dimension_semantics<parallel>], iteration_bounds = array<i64: 1>, scalar_prefetch = 0 : i64, scratch_operands = 0 : i64, tpu.core_type = #tpu.core_type<tc>, window_params = [{transform_indices = @transform_0, window_bounds = array<i64: 8, 16>}, {transform_indices = @transform_1, window_bounds = array<i64: 8, 16>}, {transform_indices = @transform_2, window_bounds = array<i64: 8, 16>}, {transform_indices = @transform_3, window_bounds = array<i64: 8, 3>}, {transform_indices = @transform_4, window_bounds = array<i64: 8, 48>}, {transform_indices = @transform_5, window_bounds = array<i64: 8, 32>}, {pipeline_mode = #tpu.pipeline_mode<synchronous>, transform_indices = @transform_6, window_bounds = array<i64: 272, 32>}, {transform_indices = @transform_7, window_bounds = array<i64: 8, 8>}]} {
    %c0 = arith.constant 0 : index
    %c0_0 = arith.constant 0 : index
    %0 = vector.load %arg7[%c0, %c0_0] : memref<272x32xf32, #tpu.memory_space<vmem>>, vector<16x32xf32>
    %c16 = arith.constant 16 : index
    %c0_1 = arith.constant 0 : index
    %1 = vector.load %arg7[%c16, %c0_1] : memref<272x32xf32, #tpu.memory_space<vmem>>, vector<48x32xf32>
    %c64 = arith.constant 64 : index
    %c0_2 = arith.constant 0 : index
    %2 = vector.load %arg7[%c64, %c0_2] : memref<272x32xf32, #tpu.memory_space<vmem>>, vector<32x32xf32>
    %c96 = arith.constant 96 : index
    %c0_3 = arith.constant 0 : index
    %3 = vector.load %arg7[%c96, %c0_3] : memref<272x32xf32, #tpu.memory_space<vmem>>, vector<3x32xf32>
    %c104 = arith.constant 104 : index
    %c0_4 = arith.constant 0 : index
    %4 = vector.load %arg7[%c104, %c0_4] : memref<272x32xf32, #tpu.memory_space<vmem>>, vector<8x32xf32>
    %5 = vector.extract_strided_slice %4 {offsets = [0, 0], sizes = [1, 32], strides = [1, 1]} : vector<8x32xf32> to vector<1x32xf32>
    %6 = vector.extract_strided_slice %4 {offsets = [1, 0], sizes = [1, 32], strides = [1, 1]} : vector<8x32xf32> to vector<1x32xf32>
    %7 = vector.extract_strided_slice %4 {offsets = [2, 0], sizes = [1, 32], strides = [1, 1]} : vector<8x32xf32> to vector<1x32xf32>
    %8 = vector.extract_strided_slice %4 {offsets = [3, 0], sizes = [1, 32], strides = [1, 1]} : vector<8x32xf32> to vector<1x32xf32>
    %c112 = arith.constant 112 : index
    %c0_5 = arith.constant 0 : index
    %9 = vector.load %arg7[%c112, %c0_5] : memref<272x32xf32, #tpu.memory_space<vmem>>, vector<32x32xf32>
    %c144 = arith.constant 144 : index
    %c0_6 = arith.constant 0 : index
    %10 = vector.load %arg7[%c144, %c0_6] : memref<272x32xf32, #tpu.memory_space<vmem>>, vector<32x32xf32>
    %c176 = arith.constant 176 : index
    %c0_7 = arith.constant 0 : index
    %11 = vector.load %arg7[%c176, %c0_7] : memref<272x32xf32, #tpu.memory_space<vmem>>, vector<32x32xf32>
    %c208 = arith.constant 208 : index
    %c0_8 = arith.constant 0 : index
    %12 = vector.load %arg7[%c208, %c0_8] : memref<272x32xf32, #tpu.memory_space<vmem>>, vector<32x32xf32>
    %c240 = arith.constant 240 : index
    %c0_9 = arith.constant 0 : index
    %13 = vector.load %arg7[%c240, %c0_9] : memref<272x32xf32, #tpu.memory_space<vmem>>, vector<32x32xf32>
    %c0_10 = arith.constant 0 : index
    %c0_11 = arith.constant 0 : index
    %14 = vector.load %arg1[%c0_10, %c0_11] : memref<8x16xf32, #tpu.memory_space<vmem>>, vector<8x16xf32>
    %cst = arith.constant dense<0.000000e+00> : vector<8x32xf32>
    %15 = tpu.matmul %14, %0, %cst {dimension_numbers = #tpu.dot_dimension_numbers<[1], [0], [0], [1], [0, 0, 1, 1], [], []>} : vector<8x16xf32>, vector<16x32xf32>, vector<8x32xf32> -> vector<8x32xf32>
    %16 = vector.broadcast %5 : vector<1x32xf32> to vector<8x32xf32>
    %17 = arith.addf %15, %16 : vector<8x32xf32>
    %cst_12 = arith.constant 0.000000e+00 : f32
    %18 = vector.broadcast %cst_12 : f32 to vector<8x32xf32>
    %19 = arith.maximumf %17, %18 : vector<8x32xf32>
    %c0_13 = arith.constant 0 : index
    %c0_14 = arith.constant 0 : index
    %20 = vector.load %arg2[%c0_13, %c0_14] : memref<8x16xf32, #tpu.memory_space<vmem>>, vector<8x16xf32>
    %cst_15 = arith.constant dense<0.000000e+00> : vector<8x32xf32>
    %21 = tpu.matmul %20, %0, %cst_15 {dimension_numbers = #tpu.dot_dimension_numbers<[1], [0], [0], [1], [0, 0, 1, 1], [], []>} : vector<8x16xf32>, vector<16x32xf32>, vector<8x32xf32> -> vector<8x32xf32>
    %22 = vector.broadcast %5 : vector<1x32xf32> to vector<8x32xf32>
    %23 = arith.addf %21, %22 : vector<8x32xf32>
    %cst_16 = arith.constant 0.000000e+00 : f32
    %24 = vector.broadcast %cst_16 : f32 to vector<8x32xf32>
    %25 = arith.maximumf %23, %24 : vector<8x32xf32>
    %c0_17 = arith.constant 0 : index
    %c0_18 = arith.constant 0 : index
    %26 = vector.load %arg3[%c0_17, %c0_18] : memref<8x16xf32, #tpu.memory_space<vmem>>, vector<8x16xf32>
    %cst_19 = arith.constant dense<0.000000e+00> : vector<8x32xf32>
    %27 = tpu.matmul %26, %0, %cst_19 {dimension_numbers = #tpu.dot_dimension_numbers<[1], [0], [0], [1], [0, 0, 1, 1], [], []>} : vector<8x16xf32>, vector<16x32xf32>, vector<8x32xf32> -> vector<8x32xf32>
    %28 = vector.broadcast %5 : vector<1x32xf32> to vector<8x32xf32>
    %29 = arith.addf %27, %28 : vector<8x32xf32>
    %cst_20 = arith.constant 0.000000e+00 : f32
    %30 = vector.broadcast %cst_20 : f32 to vector<8x32xf32>
    %31 = arith.maximumf %29, %30 : vector<8x32xf32>
    %c0_21 = arith.constant 0 : index
    %c0_22 = arith.constant 0 : index
    %32 = vector.load %arg4[%c0_21, %c0_22] : memref<8x3xf32, #tpu.memory_space<vmem>>, vector<8x3xf32>
    %cst_23 = arith.constant dense<0.000000e+00> : vector<8x32xf32>
    %33 = tpu.matmul %32, %3, %cst_23 {dimension_numbers = #tpu.dot_dimension_numbers<[1], [0], [0], [1], [0, 0, 1, 1], [], []>} : vector<8x3xf32>, vector<3x32xf32>, vector<8x32xf32> -> vector<8x32xf32>
    %c0_24 = arith.constant 0 : index
    %c0_25 = arith.constant 0 : index
    %34 = vector.load %arg5[%c0_24, %c0_25] : memref<8x48xf32, #tpu.memory_space<vmem>>, vector<8x48xf32>
    %cst_26 = arith.constant dense<0.000000e+00> : vector<8x32xf32>
    %35 = tpu.matmul %34, %1, %cst_26 {dimension_numbers = #tpu.dot_dimension_numbers<[1], [0], [0], [1], [0, 0, 1, 1], [], []>} : vector<8x48xf32>, vector<48x32xf32>, vector<8x32xf32> -> vector<8x32xf32>
    %36 = arith.addf %33, %35 : vector<8x32xf32>
    %37 = vector.broadcast %6 : vector<1x32xf32> to vector<8x32xf32>
    %38 = arith.addf %36, %37 : vector<8x32xf32>
    %cst_27 = arith.constant 0.000000e+00 : f32
    %39 = vector.broadcast %cst_27 : f32 to vector<8x32xf32>
    %40 = arith.maximumf %38, %39 : vector<8x32xf32>
    %c0_28 = arith.constant 0 : index
    %c0_29 = arith.constant 0 : index
    %41 = vector.load %arg6[%c0_28, %c0_29] : memref<8x32xf32, #tpu.memory_space<vmem>>, vector<8x32xf32>
    %cst_30 = arith.constant dense<0.000000e+00> : vector<8x32xf32>
    %42 = tpu.matmul %41, %2, %cst_30 {dimension_numbers = #tpu.dot_dimension_numbers<[1], [0], [0], [1], [0, 0, 1, 1], [], []>} : vector<8x32xf32>, vector<32x32xf32>, vector<8x32xf32> -> vector<8x32xf32>
    %43 = vector.broadcast %7 : vector<1x32xf32> to vector<8x32xf32>
    %44 = arith.addf %42, %43 : vector<8x32xf32>
    %cst_31 = arith.constant 0.000000e+00 : f32
    %45 = vector.broadcast %cst_31 : f32 to vector<8x32xf32>
    %46 = arith.maximumf %44, %45 : vector<8x32xf32>
    %cst_32 = arith.constant dense<0.000000e+00> : vector<8x32xf32>
    %47 = tpu.matmul %19, %9, %cst_32 {dimension_numbers = #tpu.dot_dimension_numbers<[1], [0], [0], [1], [0, 0, 1, 1], [], []>} : vector<8x32xf32>, vector<32x32xf32>, vector<8x32xf32> -> vector<8x32xf32>
    %cst_33 = arith.constant dense<0.000000e+00> : vector<8x32xf32>
    %48 = tpu.matmul %25, %10, %cst_33 {dimension_numbers = #tpu.dot_dimension_numbers<[1], [0], [0], [1], [0, 0, 1, 1], [], []>} : vector<8x32xf32>, vector<32x32xf32>, vector<8x32xf32> -> vector<8x32xf32>
    %49 = arith.addf %47, %48 : vector<8x32xf32>
    %cst_34 = arith.constant dense<0.000000e+00> : vector<8x32xf32>
    %50 = tpu.matmul %31, %11, %cst_34 {dimension_numbers = #tpu.dot_dimension_numbers<[1], [0], [0], [1], [0, 0, 1, 1], [], []>} : vector<8x32xf32>, vector<32x32xf32>, vector<8x32xf32> -> vector<8x32xf32>
    %51 = arith.addf %49, %50 : vector<8x32xf32>
    %cst_35 = arith.constant dense<0.000000e+00> : vector<8x32xf32>
    %52 = tpu.matmul %40, %12, %cst_35 {dimension_numbers = #tpu.dot_dimension_numbers<[1], [0], [0], [1], [0, 0, 1, 1], [], []>} : vector<8x32xf32>, vector<32x32xf32>, vector<8x32xf32> -> vector<8x32xf32>
    %53 = arith.addf %51, %52 : vector<8x32xf32>
    %cst_36 = arith.constant dense<0.000000e+00> : vector<8x32xf32>
    %54 = tpu.matmul %46, %13, %cst_36 {dimension_numbers = #tpu.dot_dimension_numbers<[1], [0], [0], [1], [0, 0, 1, 1], [], []>} : vector<8x32xf32>, vector<32x32xf32>, vector<8x32xf32> -> vector<8x32xf32>
    %55 = arith.addf %53, %54 : vector<8x32xf32>
    %56 = vector.broadcast %8 : vector<1x32xf32> to vector<8x32xf32>
    %57 = arith.addf %55, %56 : vector<8x32xf32>
    %58 = vector.extract_strided_slice %57 {offsets = [0, 0], sizes = [8, 8], strides = [1, 1]} : vector<8x32xf32> to vector<8x8xf32>
    %c0_37 = arith.constant 0 : index
    %c0_38 = arith.constant 0 : index
    %59 = vector.load %arg8[%c0_37, %c0_38] : memref<8x8xf32, #tpu.memory_space<vmem>>, vector<8x8xf32>
    tpu.vector_store %arg8[%c0_37, %c0_38], %58 {strides = array<i32>} : memref<8x8xf32, #tpu.memory_space<vmem>>, vector<8x8xf32>,
    return
  }
  func.func @transform_0(%arg0: i32) -> (i32, i32) {
    %c0_i32 = arith.constant 0 : i32
    %c0_i32_0 = arith.constant 0 : i32
    return %arg0, %c0_i32 : i32, i32
  }
  func.func @transform_1(%arg0: i32) -> (i32, i32) {
    %c0_i32 = arith.constant 0 : i32
    %c0_i32_0 = arith.constant 0 : i32
    return %arg0, %c0_i32 : i32, i32
  }
  func.func @transform_2(%arg0: i32) -> (i32, i32) {
    %c0_i32 = arith.constant 0 : i32
    %c0_i32_0 = arith.constant 0 : i32
    return %arg0, %c0_i32 : i32, i32
  }
  func.func @transform_3(%arg0: i32) -> (i32, i32) {
    %c0_i32 = arith.constant 0 : i32
    %c0_i32_0 = arith.constant 0 : i32
    return %arg0, %c0_i32 : i32, i32
  }
  func.func @transform_4(%arg0: i32) -> (i32, i32) {
    %c0_i32 = arith.constant 0 : i32
    %c0_i32_0 = arith.constant 0 : i32
    return %arg0, %c0_i32 : i32, i32
  }
  func.func @transform_5(%arg0: i32) -> (i32, i32) {
    %c0_i32 = arith.constant 0 : i32
    %c0_i32_0 = arith.constant 0 : i32
    return %arg0, %c0_i32 : i32, i32
  }
  func.func @transform_6(%arg0: i32) -> (i32, i32) {
    %c0_i32 = arith.constant 0 : i32
    %c0_i32_0 = arith.constant 0 : i32
    %c0_i32_1 = arith.constant 0 : i32
    return %c0_i32, %c0_i32_0 : i32, i32
  }
  func.func @transform_7(%arg0: i32) -> (i32, i32) {
    %c0_i32 = arith.constant 0 : i32
    %c0_i32_0 = arith.constant 0 : i32
    return %arg0, %c0_i32 : i32, i32
  }
}

</mosaic_0001>

<bundles_post_ra>
// kernel: tpu_custom_call.1
= control target key start
LH: loop header
LB: loop body
LE: loop exit
PB: predicated region body
PF: predicated region fallthrough
CT: control target
= control target key end

     0   :  { %v1169_v2 = vmov 0.0|0.0   ;;  %vm1170_vm0 = vmmov 0   ;;  %v1171_v6 = vmov 0.0   ;;  %vm66_vm1 = vcmask 130048   ;;  %s1407_s0 = inlined_call_operand.vmem [shape: f32[8,16], index: 0, kind: input, shape index: {}]   ;;  %s1408_s1 = inlined_call_operand.vmem [shape: f32[8,16], index: 1, kind: input, shape index: {}]   ;;  %s1409_s2 = inlined_call_operand.vmem [shape: f32[8,16], index: 2, kind: input, shape index: {}]   ;;  %s1410_s3 = inlined_call_operand.vmem [shape: f32[8,3], index: 3, kind: input, shape index: {}]   ;;  %s1411_s4 = inlined_call_operand.vmem [shape: f32[8,48], index: 4, kind: input, shape index: {}]   ;;  %s1412_s5 = inlined_call_operand.vmem [shape: f32[8,32], index: 5, kind: input, shape index: {}]   ;;  %s1413_s6 = inlined_call_operand.vmem [shape: f32[272,32], index: 6, kind: input, shape index: {}]   ;;  %s1414_s7 = inlined_call_operand.hbm [shape: f32[8,8], index: 7, kind: output, shape index: {}]  }
   0x1   :  { %v27_v0 = vld [vmem:[%s1413_s6] sm:$0xff]  ;;  %v28_v1 = vld [vmem:[%s1413_s6 + $0x8] sm:$0xff]  ;;  %1087 = vmatprep.subr.bf16.mxu0 %v1169_v2  ;;  %1090 = vmatprep.subr.bf16.mxu1 %v1169_v2  ;;  %v29_v4 = vld [vmem:[%s1413_s6 + $0x10] sm:$0xff]  ;;  %vm371_vm2 = vcmask 1042432  }
   0x2   :  { %v1088_v3 = vpack.c.bf16 %v28_v1, %v27_v0  ;;  %v30_v5 = vld [vmem:[%s1413_s6 + $0x18] sm:$0xff]  ;;  %984 = vmatprep.mubr.msk.f32.mxu0 %vm1170_vm0, %v1171_v6  ;;  %991 = vmatprep.mubr.msk.f32.mxu1 %vm1170_vm0, %v1171_v6  ;;  %v61_v7 = vld [vmem:[%s1407_s0] sm:$0xff]  ;;  %v32_v11 = vld [vmem:[%s1413_s6 + $0x28] sm:$0xff] }
   0x3   :  { %v141_v8 = vld [vmem:[%s1408_s1] sm:$0xff]  ;;  %v1097_v9 = vpack.c.bf16 %v30_v5, %v29_v4  ;;  %v36_v16 = vld [vmem:[%s1413_s6 + $0x48] sm:$0xff]  ;;  %v33_v17 = vld [vmem:[%s1413_s6 + $0x30] sm:$0xff] }
   0x4   :  { %1089 = vmatpush3.bf16.msra.mxu0 %v1088_v3  ;;  %1092 = vmatpush3.bf16.msra.mxu1 %v1088_v3  ;;  %v31_v10 = vld [vmem:[%s1413_s6 + $0x20] sm:$0xff]  ;;  %v34_v18 = vld [vmem:[%s1413_s6 + $0x38] sm:$0xff] }
   0x5   :  { %1093 = vmatprep.subr.bf16.mxu0 %v1169_v2  ;;  %1096 = vmatprep.subr.bf16.mxu1 %v1169_v2  ;;  %v216_v12 = vld [vmem:[%s1409_s2] sm:$0xff]  ;;  %v1100_v13 = vpack.c.bf16 %v32_v11, %v31_v10 }
   0x6   :  { %v39_v14 = vld [vmem:[%s1413_s6 + $0x60] sm:$0x7] }
   0x7   :  { %985 = vmatmul.mubr.msk.f32.vlgmr.msra.gmra.mrb[0].mxu0 %vm66_vm1, %v61_v7  ;;  %992 = vmatmul.mubr.msk.f32.vlgmr.msra.gmra.mrb[0].mxu1 %vm66_vm1, %v141_v8  ;;  %v35_v15 = vld [vmem:[%s1413_s6 + $0x40] sm:$0xff] }
   0x8   :  { %1095 = vmatpush3.bf16.msra.mxu0 %v1088_v3  ;;  %1098 = vmatpush3.bf16.msra.mxu1 %v1097_v9 }
   0x9   :  { %998 = vmatprep.mubr.msk.f32.mxu0 %vm1170_vm0, %v1171_v6  ;;  %1099 = vmatprep.subr.bf16.mxu1 %v1169_v2 }
   0xa   :  { %12 = vsyncpa [#allocation3], 0  ;;  %1016 = vmatprep.subr.mxu0 %v1171_v6  ;;  %1013 = vmatprep.mubr.msk.f32.mxu1 %vm1170_vm0, %v1171_v6  ;;  %v291_v19 = vld [vmem:[%s1410_s3] sm:$0xff]  ;;  %vm367_vm3 = vcmask 23552   ;;  %v1106_v20 = vpack.c.bf16 %v36_v16, %v35_v15  ;;  %v1103_v21 = vpack.c.bf16 %v34_v18, %v33_v17  ;;  %v37_v22 = vld [vmem:[%s1413_s6 + $0x50] sm:$0xff]  ;;  %vm293_vm4 = vcmask 392192  }
   0xb   :  { %999 = vmatmul.mubr.msk.f32.vlgmr.msra.gmra.mrb[2].mxu0 %vm66_vm1, %v216_v12  ;;  %v38_v23 = vld [vmem:[%s1413_s6 + $0x58] sm:$0xff]  ;;  %v45_v24 = vld [vmem:[%s1413_s6 + $0x90] sm:$0xff]  ;;  %v292_v26 = vld [vmem:[%s1411_s4] sm:$0xff]  ;;  %vm456_vm5 = vcmask 261120   ;;  %v62_v39 = vlaneseq  ;;  %vm904_vm6 = vcmask 64512  }
   0xc   :  { %1101 = vmatpush3.bf16.msra.mxu1 %v1100_v13  ;;  %1017 = vmatpush3.msk.msra.mxu0 %vm371_vm2, %v39_v14  ;;  %v46_v25 = vld [vmem:[%s1413_s6 + $0x98] sm:$0xff]  ;;  %v1109_v27 = vpack.c.bf16 %v38_v23, %v37_v22  ;;  %v41_v29 = vld [vmem:[%s1413_s6 + $0x70] sm:$0xff]  ;;  %v451_v31 = vld [vmem:[%s1412_s5] sm:$0xff] }
   0xd   :  { %1018 = vmatprep.mubr.msk.f32.mxu0 %vm1170_vm0, %v1171_v6  ;;  %1105 = vmatprep.subr.bf16.mxu0 %v1169_v2  ;;  %v1112_v28 = vpack.c.bf16 %v46_v25, %v45_v24  ;;  %v42_v30 = vld [vmem:[%s1413_s6 + $0x78] sm:$0xff]  ;;  %v47_v33 = vld [vmem:[%s1413_s6 + $0xa0] sm:$0xff]  ;;  %v48_v34 = vld [vmem:[%s1413_s6 + $0xa8] sm:$0xff]  ;;  %v1329_v40 = vshrl.u32 %v62_v39, 7 }
   0xe   :  { %1102 = vmatprep.subr.bf16.mxu1 %v1169_v2  ;;  %v1118_v32 = vpack.c.bf16 %v42_v30, %v41_v29  ;;  %v1115_v35 = vpack.c.bf16 %v48_v34, %v47_v33  ;;  %v43_v36 = vld [vmem:[%s1413_s6 + $0x80] sm:$0xff]  ;;  %v44_v37 = vld [vmem:[%s1413_s6 + $0x88] sm:$0xff]  ;;  %v49_v44 = vld [vmem:[%s1413_s6 + $0xb0] sm:$0xff] }
   0xf   :  { %1019 = vmatmul.mubr.msk.f32.vlgmr.msra.gmra.mrb[4].mxu0 %vm367_vm3, %v291_v19  ;;  %v1121_v38 = vpack.c.bf16 %v44_v37, %v43_v36  ;;  %v64_v41 = vsub.s32 0, %v1329_v40  ;;  %v1335_v42 = vld [vmem:[%s1413_s6 + $0x68] sm:$0xff]  ;;  %v50_v45 = vld [vmem:[%s1413_s6 + $0xb8] sm:$0xff]  ;;  %v53_v48 = vld [vmem:[%s1413_s6 + $0xd0] sm:$0xff]  ;;  %v447_v3 = vsub.s32 1, %v1329_v40  ;;  %v454_v10 = vsub.s32 2, %v1329_v40 }
  0x10   :  { %1107 = vmatpush3.bf16.msra.mxu0 %v1106_v20  ;;  %1104 = vmatpush3.bf16.msra.mxu1 %v1103_v21  ;;  %v54_v49 = vld [vmem:[%s1413_s6 + $0xd8] sm:$0xff]  ;;  %v1124_v54 = vpack.c.bf16 %v50_v45, %v49_v44  ;;  %v51_v57 = vld [vmem:[%s1413_s6 + $0xc0] sm:$0xff]  ;;  %v52_v58 = vld [vmem:[%s1413_s6 + $0xc8] sm:$0xff] }
  0x11   :  { %1108 = vmatprep.subr.bf16.mxu0 %v1169_v2  ;;  %1029 = vmatprep.mubr.msk.f32.mxu0 %vm1170_vm0, %v1171_v6  ;;  %v65_v43 = vrot.slane %v1335_v42, %v64_v41  ;;  %v1130_v59 = vpack.c.bf16 %v54_v49, %v53_v48  ;;  %v55_v61 = vld [vmem:[%s1413_s6 + $0xe0] sm:$0xff]  ;;  %v56_v62 = vld [vmem:[%s1413_s6 + $0xe8] sm:$0xff]  ;;  %v1127_v0 = vpack.c.bf16 %v52_v58, %v51_v57  ;;  %v57_v4 = vld [vmem:[%s1413_s6 + $0xf0] sm:$0xff] }
  0x12   :  { %1111 = vmatprep.subr.bf16.mxu1 %v1169_v2  ;;  %v58_v5 = vld [vmem:[%s1413_s6 + $0xf8] sm:$0xff]  ;;  %v1133_v7 = vpack.c.bf16 %v56_v62, %v55_v61  ;;  %v448_v13 = vrot.slane %v1335_v42, %v447_v3  ;;  %v59_v14 = vld [vmem:[%s1413_s6 + $0x100] sm:$0xff]  ;;  %v60_v15 = vld [vmem:[%s1413_s6 + $0x108] sm:$0xff]  ;;  %v455_v19 = vrot.slane %v1335_v42, %v454_v10  ;;  %s1172_s6 = smov [#allocation2]  }
  0x13   :  { %1014 = vmatmul.mubr.msk.f32.vlgmr.msra.gmra.mrb[2].mxu1 %vm293_vm4, %v292_v26  ;;  %v1136_v11 = vpack.c.bf16 %v58_v5, %v57_v4  ;;  %v1139_v20 = vpack.c.bf16 %v60_v15, %v59_v14  ;;  %s912_s21 = sshll.u32 %s1172_s6, 4  ;;  %s913_s21 = int_to_ptr.vmem [resolvable:$true] %s912_s21 }
  0x14   :  { %1110 = vmatpush3.bf16.msra.mxu0 %v1109_v27  ;;  %1113 = vmatpush3.bf16.msra.mxu1 %v1112_v28  ;;  %s1145_s22 = scalar_lea.vmem %s913_s21, 128  ;;  %p1150_p1 = scmp.lt.s32.totalorder %s913_s21, %s913_s21 }
  0x15   :  { %1117 = vmatprep.subr.bf16.mxu0 %v1169_v2  ;;  %1114 = vmatprep.subr.bf16.mxu1 %v1169_v2  ;;  %p1146_p0 = scmp.ne.s32.totalorder %s913_s21, %s1145_s22  ;;  %p1151_p2 = scmp.lt.s32.totalorder %s1145_s22, %s1145_s22 }
  0x16   :  { %1040 = vmatprep.mubr.msk.f32.mxu1 %vm1170_vm0, %v1171_v6 }
  0x17   :  { %1030 = vmatmul.mubr.msk.f32.vlgmr.msra.gmra.mrb[6].mxu0 %vm456_vm5, %v451_v31  ;;  %p1152_p3 = por %p1151_p2, %p1150_p1 }
  0x18   :  { %1119 = vmatpush3.bf16.msra.mxu0 %v1118_v32  ;;  %1051 = vmatprep.mubr.msk.f32.mxu0 %vm1170_vm0, %v1171_v6 }
  0x19   :  { %1120 = vmatprep.subr.bf16.mxu0 %v1169_v2  ;;  %1116 = vmatpush3.bf16.msra.mxu1 %v1115_v35  ;;  %p1153_p4 = pnand %p1152_p3, %p1146_p0 }
  0x1a   :  { %1123 = vmatprep.subr.bf16.mxu1 %v1169_v2 }
  0x1c   :  { %1122 = vmatpush3.bf16.msra.mxu0 %v1121_v38 }
  0x1d   :  { %1129 = vmatprep.subr.bf16.mxu0 %v1169_v2 }
  0xda   :  { %v136_v46 = vpop.f32.mrb[0].mxu0  ;;  %v211_v47 = vpop.f32.mrb[0].mxu1 }
  0xdb   :  { %v137_v50 = vadd.f32 %v136_v46, %v65_v43  ;;  %v212_v51 = vadd.f32 %v211_v47, %v65_v43  ;;  %v986_v52 = vpop.f32.mrb[1].mxu0  ;;  %v993_v53 = vpop.f32.mrb[1].mxu1 }
  0xdd   :  { %v140_v55 = vmax.f32 %v137_v50, 0.0  ;;  %v215_v56 = vmax.f32 %v212_v51, 0.0 }
  0xde   :  { %v286_v60 = vpop.f32.mrb[2].mxu0 }
  0xdf   :  { %v1000_v63 = vpop.f32.mrb[3].mxu0  ;;  %1041 = vmatmul.mubr.msk.f32.vlgmr.msra.gmra.mrb[4].mxu1 %vm456_vm5, %v215_v56  ;;  %1052 = vmatmul.mubr.msk.f32.vlgmr.msra.gmra.mrb[8].mxu0 %vm456_vm5, %v140_v55  ;;  %v287_v1 = vadd.f32 %v286_v60, %v65_v43 }
  0xe0   :  { %1125 = vmatpush3.bf16.msra.mxu1 %v1124_v54  ;;  %1062 = vmatprep.mubr.msk.f32.mxu1 %vm1170_vm0, %v1171_v6 }
  0xe1   :  { %1126 = vmatprep.subr.bf16.mxu1 %v1169_v2  ;;  %1131 = vmatpush3.bf16.msra.mxu0 %v1130_v59  ;;  %v290_v12 = vmax.f32 %v287_v1, 0.0 }
  0xe2   :  { %v441_v8 = vpop.f32.mrb[4].mxu0  ;;  %1132 = vmatprep.subr.bf16.mxu0 %v1169_v2  ;;  %1073 = vmatprep.mubr.msk.f32.mxu0 %vm1170_vm0, %v1171_v6 }
  0xe3   :  { %v1020_v9 = vpop.f32.mrb[5].mxu0 }
  0xe4   :  { %1128 = vmatpush3.bf16.msra.mxu1 %v1127_v0 }
  0xe5   :  { %1135 = vmatprep.subr.bf16.mxu1 %v1169_v2  ;;  %1134 = vmatpush3.bf16.msra.mxu0 %v1133_v7 }
  0xe6   :  { %v363_v16 = vpop.f32.mrb[2].mxu1 }
  0xe7   :  { %v442_v17 = vadd.f32 %v441_v8, %v363_v16  ;;  %1063 = vmatmul.mubr.msk.f32.vlgmr.msra.gmra.mrb[6].mxu1 %vm456_vm5, %v290_v12  ;;  %v1015_v18 = vpop.f32.mrb[3].mxu1 }
  0xe8   :  { %1137 = vmatpush3.bf16.msra.mxu1 %v1136_v11  ;;  %1084 = vmatprep.mubr.msk.f32.mxu1 %vm1170_vm0, %v1171_v6 }
  0xe9   :  { %v449_v21 = vadd.f32 %v448_v13, %v442_v17  ;;  %1138 = vmatprep.subr.bf16.mxu1 %v1169_v2  ;;  %v901_v2 = vsub.s32 3, %v1329_v40 }
  0xea   :  { %v526_v22 = vpop.f32.mrb[6].mxu0 }
  0xeb   :  { %v450_v23 = vmax.f32 %v449_v21, 0.0  ;;  %v527_v24 = vadd.f32 %v526_v22, %v455_v19  ;;  %v1031_v25 = vpop.f32.mrb[7].mxu0  ;;  %v902_v37 = vrot.slane %v1335_v42, %v901_v2 }
  0xec   :  { %1140 = vmatpush3.bf16.msra.mxu1 %v1139_v20 }
  0xed   :  { %v530_v26 = vmax.f32 %v527_v24, 0.0  ;;  %1074 = vmatmul.mubr.msk.f32.vlgmr.msra.gmra.mrb[10].mxu0 %vm456_vm5, %v450_v23 }
  0xef   :  { %1085 = vmatmul.mubr.msk.f32.vlgmr.msra.gmra.mrb[8].mxu1 %vm456_vm5, %v530_v26 }
 0x1b2   :  { %v600_v27 = vpop.f32.mrb[4].mxu1  ;;  %v673_v28 = vpop.f32.mrb[8].mxu0 }
 0x1b3   :  { %v674_v29 = vadd.f32 %v673_v28, %v600_v27  ;;  %v1042_v30 = vpop.f32.mrb[5].mxu1  ;;  %v1053_v31 = vpop.f32.mrb[9].mxu0 }
 0x1ba   :  { %v746_v32 = vpop.f32.mrb[6].mxu1 }
 0x1bb   :  { %v750_v6 = vadd.f32 %v746_v32, %v674_v29  ;;  %v1064_v33 = vpop.f32.mrb[7].mxu1 }
 0x1c0   :  { %v820_v34 = vpop.f32.mrb[10].mxu0 }
 0x1c1   :  { %v824_v35 = vadd.f32 %v820_v34, %v750_v6  ;;  %v1075_v36 = vpop.f32.mrb[11].mxu0 }
 0x1c2   :  { %v894_v38 = vpop.f32.mrb[8].mxu1 }
 0x1c3   :  { %v898_v39 = vadd.f32 %v894_v38, %v824_v35  ;;  %v1086_v41 = vpop.f32.mrb[9].mxu1 }
 0x1c5   :  { %v903_v43 = vadd.f32 %v902_v37, %v898_v39 }
 0x1c7   :  { %905 = vst.msk [vmem:[#allocation2] sm:$0xff] %vm904_vm6, %v903_v43 }
 0x1c8   :  { %1156 = shalt.err (!%p1153_p4)
}
 0x1c9   :  { %s1157_s24 = scalar_lea.hbm %s1414_s7, 128 }
 0x1ca   :  { %p1158_p5 = scmp.ne.s32.totalorder %s1414_s7, %s1157_s24  ;;  %p1161_p6 = scmp.lt.u32.totalorder %s1157_s24, %s1414_s7 }
 0x1cc   :  { %p1163_p7 = pnand %p1161_p6, %p1158_p5 }
 0x1ce   :  { %1166 = shalt.err (!%p1163_p7)
}
 0x1cf   :  { %915 = dma.vmem_to_hbm [thread:$0]  %s913_s21, 128, %s1414_s7, [#allocation3]  }
 0x1d0   :  { %1167 = dma.done.wait [#allocation3], 128  }
 0x1d1   :  { %1168 = vsyncadd [#allocation3], 4294967168 }
 0x1d2   :  { %919 = vsyncpa [#allocation3], 1 }

</bundles_post_ra>
